<compile_context>
chip_gen: v7x
topology: tpu7x:2x2x1
jax: 0.10.0
libtpu: 0.0.40
codegen_flags: <defaults>
</compile_context>

<pallas_src>
import functools
import math

import jax
import jax.numpy as jnp
from jax.experimental import pallas as pl
from jax.experimental.pallas import tpu as pltpu


_TARGET_BLOCK_BYTES = 2 * 1024 * 1024   # ~2 MiB per buffer; safe on v5e/v6e/v7x
_LANE_CANDIDATES = (1024, 512, 256, 128)


def _cdiv(a: int, b: int) -> int:
    return -(-a // b)


def _round_up(x: int, m: int) -> int:
    return _cdiv(x, m) * m


def _scale_kernel(x_ref, o_ref, *, scale_factor):
    # One VPU multiply per vreg. The python-float scale is weak-typed, so the
    # compute dtype follows the input (bf16 stays bf16, f32 stays f32).
    o_ref[...] = (x_ref[...] * scale_factor).astype(o_ref.dtype)


@functools.partial(jax.jit, static_argnames=("sidelength",))
def uniform_box_warp(coordinates: jax.Array, sidelength: float) -> jax.Array:
    """Pallas equivalent of UniformBoxWarp(sidelength)(coordinates)."""
    scale_factor = 2.0 / float(sidelength)
    orig_shape = coordinates.shape
    dtype = coordinates.dtype
    itemsize = dtype.itemsize
    total = math.prod(int(d) for d in orig_shape) if orig_shape else 1

    # Pick the widest lane count that divides the element count exactly so no
    # padding (and no pad/slice HBM passes) is ever needed.
    lanes = 0
    if total > 0 and jnp.issubdtype(dtype, jnp.floating) and itemsize in (2, 4):
        for cand in _LANE_CANDIDATES:
            if total % cand == 0:
                lanes = cand
                break

    if lanes == 0:
        # TODO(synk): ragged / unsupported-dtype fallback uses a plain fused
        # XLA multiply (1 read + 1 write, already HBM-optimal).
        return coordinates * scale_factor

    rows = total // lanes
    sublane = 8 if itemsize == 4 else 16   # f32 -> 8, bf16/f16 -> 16

    # ~2 MiB blocks, rounded down to a legal sublane multiple.
    cap_rows = max(sublane,
                   (_TARGET_BLOCK_BYTES // (lanes * itemsize)) // sublane * sublane)
    # Cap at ceil(rows/2) so the grid has >= 2 steps whenever rows allow it
    # (lets "parallel" shard the stream across both v7x TensorCores).
    tile_rows = min(cap_rows, _round_up(_cdiv(rows, 2), sublane))
    grid = _cdiv(rows, tile_rows)   # ragged last block is masked by Pallas

    x2d = coordinates.reshape(rows, lanes)   # bitcast, free
    kernel = functools.partial(_scale_kernel, scale_factor=scale_factor)

    out2d = pl.pallas_call(
        kernel,
        out_shape=jax.ShapeDtypeStruct((rows, lanes), dtype),
        grid_spec=pltpu.PrefetchScalarGridSpec(
            num_scalar_prefetch=0,
            grid=(grid,),
            in_specs=[pl.BlockSpec((tile_rows, lanes), lambda i: (i, 0))],
            out_specs=pl.BlockSpec((tile_rows, lanes), lambda i: (i, 0)),
        ),
        compiler_params=pltpu.CompilerParams(
            dimension_semantics=("parallel",),
        ),
    )(x2d)

    return out2d.reshape(orig_shape)   # bitcast, free


if __name__ == "__main__":
    key = jax.random.PRNGKey(0)
    sidelength = 16.0                  # module __init__ arg -> scale = 0.125
    scale = 2.0 / sidelength
    k1, k2, k3, k4 = jax.random.split(key, 4)

    # Primary small (batch, num_points, xyz) case on the Pallas path
    # (total = 384 elements, divisible by 128 -> lane-dense, no pad/slice).
    coords = jax.random.normal(k1, (2, 64, 3), dtype=jnp.float32)
    out = jax.block_until_ready(uniform_box_warp(coords, sidelength))
    assert out.shape == coords.shape and out.dtype == coords.dtype
    assert jnp.allclose(out, coords * scale, atol=1e-6, rtol=1e-6)

    # Multi-step grid + ragged last row-block (rows=12, tile_rows=8, grid=2).
    coords2 = jax.random.normal(k2, (2, 2048, 3), dtype=jnp.float32)
    out2 = jax.block_until_ready(uniform_box_warp(coords2, sidelength))
    assert jnp.allclose(out2, coords2 * scale, atol=1e-6, rtol=1e-6)

    # bf16 path: computed directly in bf16, sublane multiple 16.
    coords3 = jax.random.normal(k3, (2, 128, 3), dtype=jnp.bfloat16)
    out3 = jax.block_until_ready(uniform_box_warp(coords3, sidelength))
    assert out3.shape == coords3.shape and out3.dtype == jnp.bfloat16
    assert jnp.allclose(out3.astype(jnp.float32),
                        coords3.astype(jnp.float32) * scale,
                        atol=1e-2, rtol=1e-2)

    # Ragged total (9999 elements) -> plain fused-multiply fallback.
    coords4 = jax.random.normal(k4, (3, 1111, 3), dtype=jnp.float32)
    out4 = jax.block_until_ready(uniform_box_warp(coords4, sidelength))
    assert out4.shape == coords4.shape and out4.dtype == coords4.dtype
    assert jnp.allclose(out4, coords4 * scale, atol=1e-6, rtol=1e-6)

    print("KERNEL_OK")
</pallas_src>

<mosaic_0001>
module attributes {stable_mosaic.version = 11 : i64} {
  func.func @_scale_kernel(%arg0: i32, %arg1: memref<8x128xf32, #tpu.memory_space<vmem>>, %arg2: memref<8x128xf32, #tpu.memory_space<vmem>>) attributes {dimension_semantics = [#tpu.dimension_semantics<parallel>], iteration_bounds = array<i64: 1>, scalar_prefetch = 0 : i64, scratch_operands = 0 : i64, tpu.core_type = #tpu.core_type<tc>, window_params = [{transform_indices = @transform_0, window_bounds = array<i64: 8, 128>}, {transform_indices = @transform_1, window_bounds = array<i64: 8, 128>}]} {
    %c0 = arith.constant 0 : index
    %c0_0 = arith.constant 0 : index
    %0 = vector.load %arg1[%c0, %c0_0] : memref<8x128xf32, #tpu.memory_space<vmem>>, vector<8x128xf32>
    %cst = arith.constant 1.250000e-01 : f32
    %1 = vector.broadcast %cst : f32 to vector<8x128xf32>
    %2 = arith.mulf %0, %1 : vector<8x128xf32>
    %c0_1 = arith.constant 0 : index
    %c0_2 = arith.constant 0 : index
    %3 = vector.load %arg2[%c0_1, %c0_2] : memref<8x128xf32, #tpu.memory_space<vmem>>, vector<8x128xf32>
    tpu.vector_store %arg2[%c0_1, %c0_2], %2 {strides = array<i32>} : memref<8x128xf32, #tpu.memory_space<vmem>>, vector<8x128xf32>,
    return
  }
  func.func @transform_0(%arg0: i32) -> (i32, i32) {
    %c0_i32 = arith.constant 0 : i32
    %c0_i32_0 = arith.constant 0 : i32
    return %arg0, %c0_i32 : i32, i32
  }
  func.func @transform_1(%arg0: i32) -> (i32, i32) {
    %c0_i32 = arith.constant 0 : i32
    %c0_i32_0 = arith.constant 0 : i32
    return %arg0, %c0_i32 : i32, i32
  }
}

</mosaic_0001>

<bundles_post_ra>
// kernel: uniform_box_warp.1
= control target key start
LH: loop header
LB: loop body
LE: loop exit
PB: predicated region body
PF: predicated region fallthrough
CT: control target
= control target key end

     0   :  { %s66_s0 = inlined_call_operand.vmem [shape: f32[3,128], index: 0, kind: input, shape index: {}]   ;;  %s67_s1 = inlined_call_operand.vmem [shape: f32[3,128], index: 1, kind: output, shape index: {}]  }
   0x1   :  { %v8_v0 = vld [vmem:[%s66_s0] sm:$0xff] }
   0x2   :  { %v9_v1 = vmul.f32 0.125, %v8_v0 }
   0x4   :  { %10 = vst [vmem:[#allocation2] sm:$0xff] %v9_v1 }
   0xb   :  { %v28_v2 = vld [vmem:[#allocation2] sm:$0xf] }
   0xc   :  { %29 = vst [vmem:[%s67_s1] sm:$0xf] %v28_v2 }

</bundles_post_ra>
